<compile_context>
chip_gen: v7x
topology: tpu7x:2x2x1
jax: 0.10.0
libtpu: 0.0.40
codegen_flags: <defaults>
</compile_context>

<pallas_src>
import jax
import jax.numpy as jnp
from jax.experimental import pallas as pl
from jax.experimental.pallas import tpu as pltpu


# --------------------------------------------------------------------------
# helpers
# --------------------------------------------------------------------------
def _round_up(x, m):
    return ((x + m - 1) // m) * m


def _round_down(x, m):
    return (x // m) * m


def _cdiv(a, b):
    return (a + b - 1) // b


_TM_MAX = 1024  # rows per M tile upper bound (>=512 already ~85% of HBM roofline)


def _vmem_budget_and_limit():
    """Generation-aware VMEM budget (v5e/v6e: 128 MiB, v7x: 64 MiB)."""
    cap = 128 << 20
    try:
        cap = int(pltpu.get_tpu_info().vmem_capacity_bytes)
    except Exception:
        pass
    return int(cap * 0.70), int(cap * 0.75)


def _sublane_pack(*dtypes):
    """vreg sublane packing: f32 -> 8 rows, bf16 -> 16, int8/fp8 -> 32."""
    pack = 8
    for dt in dtypes:
        pack = max(pack, 8 * (4 // max(1, jnp.dtype(dt).itemsize)))
    return pack


def _pick_tiles(m_rows, k, n, x_dtype, w_dtype, out_dtype, budget):
    xb = jnp.dtype(x_dtype).itemsize
    wb = jnp.dtype(w_dtype).itemsize
    ob = jnp.dtype(out_dtype).itemsize
    pack = _sublane_pack(x_dtype, out_dtype)

    # ---- N tile: keep the whole pre-transposed weight + f32 bias resident
    # (single-buffered) when it fits in half the budget; otherwise stream
    # 256-wide (full MXU pass, lane-dense) weight tiles.
    resident_bytes = k * n * wb + n * 4
    if resident_bytes <= budget // 2:
        tn = n
    else:
        per_col = 2 * (k * wb + 4)                 # dbl-buffered weight + bias columns
        tn = (budget // 2) // max(1, per_col)
        tn = max(256, _round_down(tn, 256))
        if tn >= n:
            tn = n                                 # full-extent block (always legal)
        # TODO(synk): add a K "arbitrary" grid axis + f32 VMEM accumulator if even a
        # (K, 256) weight tile overflows VMEM (not the case for embedding-sized K).
    num_n = _cdiv(n, tn)
    resident = num_n == 1

    # ---- M tile: spend the rest on rows.  Double-buffered x/out tiles, plus the
    # single f32 dot intermediate when the output dtype is narrower than f32.
    w_buffers = 1 if resident else 2
    used = w_buffers * (k * tn * wb + tn * 4)
    per_row = 2 * (k * xb + tn * ob) + (tn * 4 if ob < 4 else 0)
    tm = max(pack, (budget - used) // max(1, per_row))
    tm = min(tm, _TM_MAX)
    if tm >= 256:
        tm = _round_down(tm, 256)                  # v6e/v7x MXUs are 2x 256x256
    else:
        tm = _round_down(tm, pack)

    if tm >= m_rows:
        tm = m_rows                                # full-dim block (always legal)
    if m_rows > pack and _cdiv(m_rows, tm) < 2:
        # v7x megacore: guarantee >= 2 M tiles so both TensorCores get work.
        tm = max(pack, _round_down(_cdiv(m_rows, 2), pack))
    num_m = _cdiv(m_rows, tm)
    if num_m > 1:
        # Rebalance so the last tile is not mostly wasted MXU/HBM work.
        tm = min(tm, _round_up(_cdiv(m_rows, num_m), pack))
        num_m = _cdiv(m_rows, tm)
    return tm, tn, num_m, num_n, resident


# --------------------------------------------------------------------------
# kernel
# --------------------------------------------------------------------------
def _linear_kernel(x_ref, w_ref, b_ref, o_ref):
    # x_ref: [TM, K], w_ref: [K, TN], b_ref: [1, TN] (f32), o_ref: [TM, TN]
    acc = jnp.dot(x_ref[...], w_ref[...], preferred_element_type=jnp.float32)
    o_ref[...] = (acc + b_ref[...]).astype(o_ref.dtype)


# --------------------------------------------------------------------------
# parameter prep (one-time, hoisted out of the forward path)
# --------------------------------------------------------------------------
def prepare_linear_params(weight, bias, param_dtype=None):
    """weight: [d_model, in_features] (torch nn.Linear layout), bias: [d_model].
    Returns (w_t [K, N], bias2d [1, N] f32).  Pass param_dtype=jnp.bfloat16 (and
    feed bf16 activations) to halve weight/x traffic if accuracy permits; the
    default keeps the module's f32 semantics."""
    w_t = weight.T                                             # [K, N], once
    if param_dtype is not None:
        w_t = w_t.astype(param_dtype)
    b2d = bias.astype(jnp.float32).reshape(1, -1)
    return w_t, b2d


# --------------------------------------------------------------------------
# forward
# --------------------------------------------------------------------------
def mock_embedding_forward(x, w_t, bias2d):
    """x: [..., in_features], w_t: [K, N], bias2d: [1, N] f32 -> [..., N]."""
    k, n = w_t.shape
    assert x.shape[-1] == k
    lead = x.shape[:-1]
    x2d = x.reshape(-1, k)                       # no padding: K block == full K extent
    m_rows = x2d.shape[0]
    out_dtype = x.dtype

    budget, vmem_limit = _vmem_budget_and_limit()
    tm, tn, num_m, num_n, resident = _pick_tiles(
        m_rows, k, n, x2d.dtype, w_t.dtype, out_dtype, budget)

    xb = jnp.dtype(x2d.dtype).itemsize
    wb = jnp.dtype(w_t.dtype).itemsize
    ob = jnp.dtype(out_dtype).itemsize
    cost = pl.CostEstimate(
        flops=2 * m_rows * k * n,
        bytes_accessed=m_rows * k * xb + k * n * wb + n * 4 + m_rows * n * ob,
        transcendentals=0,
    )

    def call(single_buffer_resident):
        def spec(shape, imap, nbuf=None):
            if nbuf is None:
                return pl.BlockSpec(shape, imap)
            return pl.BlockSpec(shape, imap, pipeline_mode=pl.Buffered(nbuf))

        # Invariant (resident) weight/bias need only one VMEM buffer.
        w_buf = 1 if (single_buffer_resident and resident) else None

        # Grid: N tiles outer, M tiles inner -> a streamed weight tile is read
        # from HBM exactly once; both axes are independent ("parallel").
        return pl.pallas_call(
            _linear_kernel,
            out_shape=jax.ShapeDtypeStruct((m_rows, n), out_dtype),
            grid_spec=pltpu.PrefetchScalarGridSpec(
                num_scalar_prefetch=0,
                grid=(num_n, num_m),
                in_specs=[
                    spec((tm, k), lambda j, i: (i, 0)),           # x rows
                    spec((k, tn), lambda j, i: (0, j), w_buf),    # weight
                    spec((1, tn), lambda j, i: (0, j), w_buf),    # bias (f32)
                ],
                out_specs=pl.BlockSpec((tm, tn), lambda j, i: (i, j)),
            ),
            compiler_params=pltpu.CompilerParams(
                dimension_semantics=("parallel", "parallel"),
                vmem_limit_bytes=vmem_limit,
            ),
            cost_estimate=cost,
        )(x2d, w_t, bias2d)

    try:
        out = call(True)
    except Exception:
        # pl.Buffered(1) not supported on this jax build -> default buffering.
        out = call(False)

    return out.reshape(*lead, n)


# --------------------------------------------------------------------------
# demo / correctness check
# --------------------------------------------------------------------------
if __name__ == "__main__":
    # Time-series embedding shapes: x [batch=2, seq=8, in_features=32] -> d_model=64.
    in_features = 32
    d_model = 64
    batch, seq = 2, 8

    key = jax.random.PRNGKey(0)
    kx, kw, kb = jax.random.split(key, 3)

    x = jax.random.normal(kx, (batch, seq, in_features), dtype=jnp.float32)
    bound = 1.0 / (in_features ** 0.5)
    weight = jax.random.uniform(kw, (d_model, in_features),
                                minval=-bound, maxval=bound, dtype=jnp.float32)
    bias = jax.random.uniform(kb, (d_model,),
                              minval=-bound, maxval=bound, dtype=jnp.float32)

    # One-time parameter prep (transpose only; no padding needed any more).
    w_t, bias2d = prepare_linear_params(weight, bias)
    w_t, bias2d = jax.block_until_ready((w_t, bias2d))

    y = mock_embedding_forward(x, w_t, bias2d)
    y = jax.block_until_ready(y)

    # Reference check against plain JAX (same semantics as torch.nn.Linear).
    y_ref = x @ weight.T + bias
    assert y.shape == (batch, seq, d_model)
    assert jnp.allclose(y, y_ref, atol=1e-5, rtol=1e-5)

    print("KERNEL_OK")
</pallas_src>

<mosaic_0001>
module attributes {stable_mosaic.version = 11 : i64} {
  func.func @_linear_kernel(%arg0: i32, %arg1: i32, %arg2: memref<8x32xf32, #tpu.memory_space<vmem>>, %arg3: memref<32x64xf32, #tpu.memory_space<vmem>>, %arg4: memref<1x64xf32, #tpu.memory_space<vmem>>, %arg5: memref<8x64xf32, #tpu.memory_space<vmem>>) attributes {dimension_semantics = [#tpu.dimension_semantics<parallel>, #tpu.dimension_semantics<parallel>], iteration_bounds = array<i64: 1, 2>, scalar_prefetch = 0 : i64, scratch_operands = 0 : i64, tpu.core_type = #tpu.core_type<tc>, window_params = [{transform_indices = @transform_0, window_bounds = array<i64: 8, 32>}, {pipeline_mode = #tpu.pipeline_mode<synchronous>, transform_indices = @transform_1, window_bounds = array<i64: 32, 64>}, {pipeline_mode = #tpu.pipeline_mode<synchronous>, transform_indices = @transform_2, window_bounds = array<i64: 1, 64>}, {transform_indices = @transform_3, window_bounds = array<i64: 8, 64>}]} {
    %c0 = arith.constant 0 : index
    %c0_0 = arith.constant 0 : index
    %0 = vector.load %arg2[%c0, %c0_0] : memref<8x32xf32, #tpu.memory_space<vmem>>, vector<8x32xf32>
    %c0_1 = arith.constant 0 : index
    %c0_2 = arith.constant 0 : index
    %1 = vector.load %arg3[%c0_1, %c0_2] : memref<32x64xf32, #tpu.memory_space<vmem>>, vector<32x64xf32>
    %cst = arith.constant dense<0.000000e+00> : vector<8x64xf32>
    %2 = tpu.matmul %0, %1, %cst {dimension_numbers = #tpu.dot_dimension_numbers<[1], [0], [0], [1], [0, 0, 1, 1], [], []>} : vector<8x32xf32>, vector<32x64xf32>, vector<8x64xf32> -> vector<8x64xf32>
    %c0_3 = arith.constant 0 : index
    %c0_4 = arith.constant 0 : index
    %3 = vector.load %arg4[%c0_3, %c0_4] : memref<1x64xf32, #tpu.memory_space<vmem>>, vector<1x64xf32>
    %4 = vector.broadcast %3 : vector<1x64xf32> to vector<8x64xf32>
    %5 = arith.addf %2, %4 : vector<8x64xf32>
    %c0_5 = arith.constant 0 : index
    %c0_6 = arith.constant 0 : index
    %6 = vector.load %arg5[%c0_5, %c0_6] : memref<8x64xf32, #tpu.memory_space<vmem>>, vector<8x64xf32>
    tpu.vector_store %arg5[%c0_5, %c0_6], %5 {strides = array<i32>} : memref<8x64xf32, #tpu.memory_space<vmem>>, vector<8x64xf32>,
    return
  }
  func.func @transform_0(%arg0: i32, %arg1: i32) -> (i32, i32) {
    %c0_i32 = arith.constant 0 : i32
    %c0_i32_0 = arith.constant 0 : i32
    return %arg1, %c0_i32 : i32, i32
  }
  func.func @transform_1(%arg0: i32, %arg1: i32) -> (i32, i32) {
    %c0_i32 = arith.constant 0 : i32
    %c0_i32_0 = arith.constant 0 : i32
    return %c0_i32, %arg0 : i32, i32
  }
  func.func @transform_2(%arg0: i32, %arg1: i32) -> (i32, i32) {
    %c0_i32 = arith.constant 0 : i32
    %c0_i32_0 = arith.constant 0 : i32
    return %c0_i32, %arg0 : i32, i32
  }
  func.func @transform_3(%arg0: i32, %arg1: i32) -> (i32, i32) {
    %c0_i32 = arith.constant 0 : i32
    return %arg1, %arg0 : i32, i32
  }
}

module attributes {stable_mosaic.version = 11 : i64} {
  func.func @_linear_kernel(%arg0: i32, %arg1: i32, %arg2: memref<8x32xf32, #tpu.memory_space<vmem>>, %arg3: memref<32x64xf32, #tpu.memory_space<vmem>>, %arg4: memref<1x64xf32, #tpu.memory_space<vmem>>, %arg5: memref<8x64xf32, #tpu.memory_space<vmem>>) attributes {dimension_semantics = [#tpu.dimension_semantics<parallel>, #tpu.dimension_semantics<parallel>], iteration_bounds = array<i64: 1, 2>, scalar_prefetch = 0 : i64, scratch_operands = 0 : i64, tpu.core_type = #tpu.core_type<tc>, window_params = [{transform_indices = @transform_0, window_bounds = array<i64: 8, 32>}, {transform_indices = @transform_1, window_bounds = array<i64: 32, 64>}, {transform_indices = @transform_2, window_bounds = array<i64: 1, 64>}, {transform_indices = @transform_3, window_bounds = array<i64: 8, 64>}]} {
    %c0 = arith.constant 0 : index
    %c0_0 = arith.constant 0 : index
    %0 = vector.load %arg2[%c0, %c0_0] : memref<8x32xf32, #tpu.memory_space<vmem>>, vector<8x32xf32>
    %c0_1 = arith.constant 0 : index
    %c0_2 = arith.constant 0 : index
    %1 = vector.load %arg3[%c0_1, %c0_2] : memref<32x64xf32, #tpu.memory_space<vmem>>, vector<32x64xf32>
    %cst = arith.constant dense<0.000000e+00> : vector<8x64xf32>
    %2 = tpu.matmul %0, %1, %cst {dimension_numbers = #tpu.dot_dimension_numbers<[1], [0], [0], [1], [0, 0, 1, 1], [], []>} : vector<8x32xf32>, vector<32x64xf32>, vector<8x64xf32> -> vector<8x64xf32>
    %c0_3 = arith.constant 0 : index
    %c0_4 = arith.constant 0 : index
    %3 = vector.load %arg4[%c0_3, %c0_4] : memref<1x64xf32, #tpu.memory_space<vmem>>, vector<1x64xf32>
    %4 = vector.broadcast %3 : vector<1x64xf32> to vector<8x64xf32>
    %5 = arith.addf %2, %4 : vector<8x64xf32>
    %c0_5 = arith.constant 0 : index
    %c0_6 = arith.constant 0 : index
    %6 = vector.load %arg5[%c0_5, %c0_6] : memref<8x64xf32, #tpu.memory_space<vmem>>, vector<8x64xf32>
    tpu.vector_store %arg5[%c0_5, %c0_6], %5 {strides = array<i32>} : memref<8x64xf32, #tpu.memory_space<vmem>>, vector<8x64xf32>,
    return
  }
  func.func @transform_0(%arg0: i32, %arg1: i32) -> (i32, i32) {
    %c0_i32 = arith.constant 0 : i32
    %c0_i32_0 = arith.constant 0 : i32
    return %arg1, %c0_i32 : i32, i32
  }
  func.func @transform_1(%arg0: i32, %arg1: i32) -> (i32, i32) {
    %c0_i32 = arith.constant 0 : i32
    %c0_i32_0 = arith.constant 0 : i32
    return %c0_i32, %arg0 : i32, i32
  }
  func.func @transform_2(%arg0: i32, %arg1: i32) -> (i32, i32) {
    %c0_i32 = arith.constant 0 : i32
    %c0_i32_0 = arith.constant 0 : i32
    return %c0_i32, %arg0 : i32, i32
  }
  func.func @transform_3(%arg0: i32, %arg1: i32) -> (i32, i32) {
    %c0_i32 = arith.constant 0 : i32
    return %arg1, %arg0 : i32, i32
  }
}

</mosaic_0001>

<bundles_post_ra>
// kernel: tpu_custom_call.1
= control target key start
LH: loop header
LB: loop body
LE: loop exit
PB: predicated region body
PF: predicated region fallthrough
CT: control target
= control target key end

     0   :  { %8 = vsyncpa [#allocation3], 0  ;;  %s1029_s0 = inlined_call_operand.hbm [shape: f32[16,32], index: 0, kind: input, shape index: {}]   ;;  %s1030_s1 = inlined_call_operand.hbm [shape: f32[32,64], index: 1, kind: input, shape index: {}]   ;;  %s1031_s2 = inlined_call_operand.hbm [shape: f32[1,64], index: 2, kind: input, shape index: {}]   ;;  %s1032_s3 = inlined_call_operand.hbm [shape: f32[16,64], index: 3, kind: output, shape index: {}]  }
   0x1   :  { %10 = vsyncpa [#allocation3 + $0x1], 0 }
   0x2   :  { %11 = vsyncpa [#allocation6], 0 }
   0x3   :  { %12 = vsyncpa [#allocation4], 0 }
   0x4   :  { %14 = vsyncpa [#allocation4 + $0x1], 0  ;;  %s778_s12 = smov 0   ;;  %s780_s13 = smov 0  }
   0x5   :  { %s782_s14 = smov 0   ;;  %s784_s15 = smov 0  }
   0x6   :  { %s786_s16 = smov 0   ;;  %s788_s17 = smov 0  }
   0x7 LB: > { %s446_s18 = sadd.s32 4294967295, %s747_s17   ;;  %s447_s19 = sadd.s32 4294967294, %s747_s17   ;;  %s747_s17 = sphi %s788_s17, %s20_s17   ;;  %s743_s16 = sphi %s786_s16, %s1054_s16   ;;  %s739_s15 = sphi %s784_s15, %s1053_s15   ;;  %s735_s14 = sphi %s782_s14, %s1052_s14   ;;  %s731_s13 = sphi %s780_s13, %s1051_s13   ;;  %s727_s12 = sphi %s778_s12, %s1050_s12  }
   0x8   : > { %p52_p0 = scmp.ne.s32.totalorder %s731_s13, %s727_s12  ;;  %p812_p1 = scmp.eq.s32.totalorder %s446_s18, 0 }
   0x9   : > { %p816_p2 = scmp.eq.s32.totalorder %s446_s18, 1  ;;  %p136_p3 = scmp.eq.s32.totalorder %s447_s19, 1 }
   0xa   : > { %s1037_s20 = scalar_select %p812_p1, 1, 0 }
   0xb   : > { %p822_p4 = por %p812_p1, %p52_p0  ;;  %p448_p5 = scmp.ge.s32.totalorder %s747_s17, 1 }
   0xc   : > { %p827_p6 = por %p136_p3, %p52_p0  ;;  %p143_p7 = scmp.lt.s32.totalorder %s747_s17, 3 }
   0xd   : > { %s1039_s22 = scalar_select %p822_p4, 1, 0 }
   0xe   : > { %s1040_s23 = scalar_select %p827_p6, 1, 0 }
   0xf   : > { %p832_p8 = pnand %p448_p5, %p143_p7  ;;  %s749_s25 = smov [#allocation5]  }
  0x10   : > { %s157_s26 = sshll.u32 %s749_s25, 4  ;;  %s750_s28 = smov [#allocation7]   ;;  %s836_s26 = int_to_ptr.vmem [resolvable:$true] %s157_s26 }
  0x11   : > { %p499_p9 = pneg %p832_p8  ;;  %s173_s29 = sshll.u32 %s750_s28, 4  ;;  %s847_s29 = int_to_ptr.vmem [resolvable:$true] %s173_s29 }
  0x12   : > { %s575_s5 = scalar_lea.hbm %s1030_s1, 512 }
  0x13   : > { %p843_p11 = pnand %p499_p9, %p812_p1  ;;  %p576_p12 = scmp.ne.s32.totalorder %s1030_s1, %s575_s5 }
  0x14   : > { %p582_p5 = scmp.lt.u32.totalorder %s575_s5, %s1030_s1 }
  0x15   : > { %p577_p13 = pneg %p843_p11 }
  0x17   : > { %p578_p0 = pnand %p577_p13, %p576_p12 }
  0x19   : > { %p579_p3 = pneg %p578_p0 }
  0x1b   : > { %p584_p7 = pnand %p582_p5, %p579_p3 }
  0x1d   : > { %587 = shalt.err (!%p584_p7)
}
  0x1e   : > { %s588_s10 = scalar_lea.vmem %s836_s26, 512  ;;  %p596_p1 = scmp.lt.s32.totalorder %s836_s26, %s836_s26 }
  0x1f   : > { %p589_p9 = scmp.ne.s32.totalorder %s836_s26, %s588_s10  ;;  %p597_p12 = scmp.lt.s32.totalorder %s588_s10, %s588_s10 }
  0x21   : > { %p591_p10 = pnand %p589_p9, %p577_p13  ;;  %p598_p0 = por %p597_p12, %p596_p1 }
  0x23   : > { %p592_p6 = pneg %p591_p10 }
  0x25   : > { %p599_p4 = pnand %p598_p0, %p592_p6 }
  0x27   : > { %602 = shalt.err (!%p599_p4)
}
  0x28   : > { %s751_s11 = smov 128   ;;  %s752_s18 = smov 8  }
  0x29   : > { %502 = dma.hbm_to_vmem [thread:$0]  (!%p843_p11), %s1030_s1, 512, %s836_s26, [#allocation6], %s751_s11, %s751_s11, %s752_s18  }
  0x2a   : > { %s603_s4 = scalar_lea.hbm %s1031_s2, 16 }
  0x2b   : > { %p604_p1 = scmp.ne.s32.totalorder %s1031_s2, %s603_s4  ;;  %p610_p10 = scmp.lt.u32.totalorder %s603_s4, %s1031_s2 }
  0x2d   : > { %p606_p4 = pnand %p604_p1, %p577_p13 }
  0x2f   : > { %p607_p6 = pneg %p606_p4 }
  0x31   : > { %p612_p3 = pnand %p610_p10, %p607_p6 }
  0x33   : > { %615 = shalt.err (!%p612_p3)
}
  0x34   : > { %s616_s26 = scalar_lea.vmem %s847_s29, 16  ;;  %s623_s9 = scalar_lea.vmem %s847_s29, 32 }
  0x35   : > { %p617_p5 = scmp.ne.s32.totalorder %s847_s29, %s616_s26  ;;  %p624_p12 = scmp.lt.s32.totalorder %s847_s29, %s847_s29 }
  0x36   : > { %p625_p0 = scmp.lt.s32.totalorder %s623_s9, %s616_s26 }
  0x37   : > { %p619_p7 = pnand %p617_p5, %p577_p13 }
  0x38   : > { %p626_p1 = por %p625_p0, %p624_p12 }
  0x39   : > { %p620_p9 = pneg %p619_p7 }
  0x3b   : > { %p627_p4 = pnand %p626_p1, %p620_p9 }
  0x3d   : > { %630 = shalt.err (!%p627_p4)
}
  0x3e   : > { %505 = dma.hbm_to_vmem [thread:$0]  (!%p843_p11), %s1031_s2, 16, %s847_s29, [#allocation6]  }
  0x3f   : > { %s29_s18 = sadd.s32 1, %s743_s16  ;;  %s39_s19 = sadd.s32 1, %s735_s14 }
  0x40   : > { %p30_p13 = scmp.ge.s32.totalorder %s29_s18, 2  ;;  %p46_p6 = scmp.ne.s32.totalorder %s735_s14, %s731_s13 }
  0x41   : > { %p47_p10 = scmp.eq.s32.totalorder %s747_s17, 0  ;;  %p516_p3 = scmp.lt.s32.totalorder %s747_s17, 2 }
  0x42   : > { %s1056_s18 = smov (%p30_p13, %s29_s18), 0  ;;  %p912_p7 = por %p816_p2, %p46_p6 }
  0x43   : > { %p48_p5 = por %p47_p10, %p46_p6  ;;  %s36_s25 = ssub.s32 %s743_s16, %s1056_s18 }
  0x44   : > { %s1043_s27 = scalar_select %p912_p7, 1, 0 }
  0x45   : > { %s184_s28 = sand.u32 1, %s735_s14   ;;  %p37_p9 = scmp.eq.s32.totalorder %s36_s25, 0 }
  0x46   : > { %s452_s29 = sshll.u32 %s184_s28, 3  ;;  %s453_s30 = sshll.u32 %s743_s16, 7 }
  0x47   : > { %s921_s4 = scalar_select %p37_p9, %s735_s14, %s39_s19  }
  0x48   : > { %s926_s7 = scalar_lea.hbm %s1029_s0, %s453_s30  ;;  %s188_s21 = scalar_lea.vmem [#allocation2], %s452_s29 }
  0x49   : > { %s195_s8 = sshll.u32 %s188_s21, 4  ;;  %p930_p2 = pnand %p516_p3, %p48_p5  ;;  %s934_s8 = int_to_ptr.vmem [resolvable:$true] %s195_s8 }
  0x4a   : > { %s185_s9 = scalar_lea.sflag [#allocation3], %s184_s28  ;;  %s631_s10 = scalar_lea.hbm %s926_s7, 128 }
  0x4b   : > { %p632_p11 = scmp.ne.s32.totalorder %s926_s7, %s631_s10  ;;  %p633_p12 = pneg %p930_p2 }
  0x4c   : > { %s636_s25 = scalar_lea.hbm %s1029_s0, 256  ;;  %p637_p4 = scmp.lt.u32.totalorder %s926_s7, %s1029_s0 }
  0x4d   : > { %p634_p0 = pnand %p633_p12, %p632_p11  ;;  %p638_p13 = scmp.lt.u32.totalorder %s636_s25, %s631_s10 }
  0x4e   : > { %p640_p10 = scmp.lt.u32.totalorder %s631_s10, %s926_s7 }
  0x4f   : > { %p635_p1 = pneg %p634_p0  ;;  %p639_p6 = por %p638_p13, %p637_p4 }
  0x51   : > { %p641_p3 = por %p640_p10, %p639_p6 }
  0x53   : > { %p642_p5 = pnand %p641_p3, %p635_p1 }
  0x55   : > { %645 = shalt.err (!%p642_p5)
}
  0x56   : > { %s646_s28 = scalar_lea.vmem %s934_s8, 128  ;;  %s753_s5 = smov [#allocation2]  }
  0x57   : > { %p647_p9 = scmp.ne.s32.totalorder %s934_s8, %s646_s28  ;;  %s651_s6 = sshll.u32 %s753_s5, 4  ;;  %s652_s6 = int_to_ptr.vmem [resolvable:$false] %s651_s6 }
  0x58   : > { %s653_s21 = scalar_lea.vmem %s652_s6, 256  ;;  %p654_p7 = scmp.lt.s32.totalorder %s934_s8, %s652_s6 }
  0x59   : > { %p649_p11 = pnand %p647_p9, %p633_p12  ;;  %p655_p4 = scmp.lt.s32.totalorder %s653_s21, %s646_s28 }
  0x5b   : > { %p650_p0 = pneg %p649_p11  ;;  %p656_p13 = por %p655_p4, %p654_p7 }
  0x5d   : > { %p657_p6 = pnand %p656_p13, %p650_p0 }
  0x5f   : > { %660 = shalt.err (!%p657_p6)
}
  0x60   : > { %509 = dma.hbm_to_vmem [thread:$0]  (!%p930_p2), %s926_s7, 128, %s934_s8, %s185_s9  }
  0x61   : > { %204 = sbr.rel (%p832_p8) target bundleno = 347 (0x15b), region = 32  ;;  %s964_s10 = sand.u32 (!%p832_p8), 1, %s731_s13  }
  0x62   : > { %s455_s11 = sshll.u32 (!%p832_p8), %s964_s10, 3  ;;  %s207_s19 = scalar_lea.sflag (!%p832_p8), [#allocation3], %s964_s10 }
  0x63   : > { %s210_s25 = scalar_lea.vmem (!%p832_p8), [#allocation2], %s455_s11  ;;  %p1045_p7 = scmp.ne.s32.totalorder (!%p832_p8), %s1039_s22, 0 }
  0x68   : > { %714 = dma.done.wait (%p1045_p7), %s207_s19, 128  }
  0x69   : > { %716 = vsyncadd (%p1045_p7), %s207_s19, 4294967168  ;;  %p1046_p12 = scmp.ne.s32.totalorder %s1037_s20, 0 }
  0x6b   : > { %718 = dma.done.wait (%p1046_p12), [#allocation6], 528  }
  0x6c   : > { %720 = vsyncadd (%p1046_p12), [#allocation6], 4294966768  ;;  %v754_v0 = vmov 0.0|0.0   ;;  %vm755_vm0 = vmmov 0   ;;  %v756_v1 = vmov 0.0   ;;  %v242_v2 = vld [vmem:[#allocation5] sm:$0xff] }
  0x6d   : > { %481 = vmatprep.subr.bf16.mxu0 %v754_v0  ;;  %478 = vmatprep.mubr.msk.f32.mxu0 %vm755_vm0, %v756_v1  ;;  %v243_v3 = vld [vmem:[#allocation5 + $0x8] sm:$0xff]  ;;  %v244_v4 = vld [vmem:[#allocation5 + $0x10] sm:$0xff]  ;;  %v245_v6 = vld [vmem:[#allocation5 + $0x18] sm:$0xff]  ;;  %vm253_vm1 = vcmask 261120   ;;  %s462_s20 = sshll.u32 %s739_s15, 7  ;;  %s240_s22 = scalar_lea.vmem [#allocation8], %s455_s11 }
  0x6e   : > { %v482_v5 = vpack.c.bf16 %v243_v3, %v242_v2  ;;  %v485_v7 = vpack.c.bf16 %v245_v6, %v244_v4  ;;  %v241_v8 = vld [vmem:[%s210_s25] sm:$0xff]  ;;  %v459_v9 = vld [vmem:[#allocation7] ss:$0 sm:$0xff]  ;;  %s344_s24 = sshll.u32 %s240_s22, 4  ;;  %vm327_vm2 = vcmask 523264   ;;  %s980_s26 = scalar_lea.hbm %s1032_s3, %s462_s20  ;;  %s982_s24 = int_to_ptr.vmem [resolvable:$true] %s344_s24 }
  0x6f   : > { %s330_s9 = scalar_lea.sflag [#allocation4], %s964_s10  ;;  %s661_s29 = scalar_lea.vmem %s982_s24, 128 }
  0x70   : > { %483 = vmatpush3.bf16.msra.mxu0 %v482_v5  ;;  %p662_p8 = scmp.ne.s32.totalorder %s982_s24, %s661_s29  ;;  %p1047_p2 = scmp.ne.s32.totalorder %s1043_s27, 0 }
  0x71   : > { %484 = vmatprep.subr.bf16.mxu0 %v754_v0  ;;  %s757_s15 = smov [#allocation8]  }
  0x72   : > { %p663_p1 = pnand %p662_p8, %p1047_p2  ;;  %s665_s30 = sshll.u32 %s757_s15, 4  ;;  %s666_s30 = int_to_ptr.vmem [resolvable:$false] %s665_s30 }
  0x73   : > { %s667_s28 = scalar_lea.vmem %s666_s30, 256  ;;  %p668_p3 = scmp.lt.s32.totalorder %s982_s24, %s666_s30 }
  0x74   : > { %486 = vmatpush3.bf16.msra.mxu0 %v485_v7  ;;  %p664_p10 = pneg %p663_p1  ;;  %p669_p5 = scmp.lt.s32.totalorder %s667_s28, %s661_s29 }
  0x76   : > { %p670_p9 = por %p669_p5, %p668_p3 }
  0x77   : > { %479 = vmatmul.mubr.msk.f32.vlgmr.msra.gmra.mrb[0].mxu0 %vm253_vm1, %v241_v8 }
  0x78   : > { %p671_p11 = pnand %p670_p9, %p664_p10 }
 0x14a   : > { %v323_v10 = vpop.f32.mrb[0].mxu0 }
 0x14b   : > { %v324_v11 = vadd.f32 %v459_v9, %v323_v10  ;;  %v480_v12 = vpop.f32.mrb[1].mxu0 }
 0x14d   : > { %328 = vst.msk [vmem:[%s240_s22] sm:$0xff] %vm327_vm2, %v324_v11 }
 0x14e   : > { %674 = shalt.err (!%p671_p11)
}
 0x14f   : > { %s675_s5 = scalar_lea.hbm %s980_s26, 128  ;;  %s679_s10 = scalar_lea.hbm %s1032_s3, 256 }
 0x150   : > { %p676_p0 = scmp.ne.s32.totalorder %s980_s26, %s675_s5  ;;  %p680_p6 = scmp.lt.u32.totalorder %s980_s26, %s1032_s3 }
 0x151   : > { %p681_p7 = scmp.lt.u32.totalorder %s679_s10, %s675_s5  ;;  %p683_p8 = scmp.lt.u32.totalorder %s675_s5, %s980_s26 }
 0x152   : > { %p677_p4 = pnand %p676_p0, %p1047_p2 }
 0x153   : > { %p682_p12 = por %p681_p7, %p680_p6 }
 0x154   : > { %p678_p13 = pneg %p677_p4 }
 0x155   : > { %p684_p1 = por %p683_p8, %p682_p12 }
 0x157   : > { %p685_p10 = pnand %p684_p1, %p678_p13 }
 0x159   : > { %688 = shalt.err (!%p685_p10)
}
 0x15a   : > { %497 = dma.vmem_to_hbm [thread:$0]  (%p1047_p2), %s982_s24, 128, %s980_s26, %s330_s9  }
 0x15b PF: > { %s356_s25 = sand.u32 1, %s727_s12   ;;  %p1048_p3 = scmp.ne.s32.totalorder %s1040_s23, 0 }
 0x15c   : > { %p1049_p5 = scmp.ge.s32.totalorder %s747_s17, 2  ;;  %s357_s20 = scalar_lea.sflag [#allocation4], %s356_s25 }
 0x15e   : > { %p511_p9 = pnand %p1049_p5, %p1048_p3 }
 0x160   : > { %722 = dma.done.wait (!%p511_p9), %s357_s20, 128  }
 0x161   : > { %724 = vsyncadd (!%p511_p9), %s357_s20, 4294967168  ;;  %s20_s17 = sadd.s32 1, %s747_s17   ;;  %s1050_s12 = smov %s731_s13 }
 0x162   : > { %p17_p11 = scmp.ge.s32.totalorder %s20_s17, 4   ;;  %s1051_s13 = smov %s735_s14 }
 0x163   : > { %s1052_s14 = smov %s921_s4  ;;  %s1053_s15 = smov %s743_s16 }
 0x164   : > { %s1054_s16 = smov %s1056_s18  ;;  %19 = sbr.rel (!%p17_p11) target bundleno = 7 (0x7), region = 87 }
 0x16b   :  { %362 = vsyncpa [#allocation3], 1 }
 0x16c   :  { %364 = vsyncpa [#allocation3 + $0x1], 1 }
 0x16d   :  { %365 = vsyncpa [#allocation6], 1 }
 0x16e   :  { %366 = vsyncpa [#allocation4], 1 }
 0x16f   :  { %368 = vsyncpa [#allocation4 + $0x1], 1 }

// kernel: tpu_custom_call.1
= control target key start
LH: loop header
LB: loop body
LE: loop exit
PB: predicated region body
PF: predicated region fallthrough
CT: control target
= control target key end

     0   :  { %8 = vsyncpa [#allocation3], 0  ;;  %s1029_s0 = inlined_call_operand.hbm [shape: f32[16,32], index: 0, kind: input, shape index: {}]   ;;  %s1030_s1 = inlined_call_operand.hbm [shape: f32[32,64], index: 1, kind: input, shape index: {}]   ;;  %s1031_s2 = inlined_call_operand.hbm [shape: f32[1,64], index: 2, kind: input, shape index: {}]   ;;  %s1032_s3 = inlined_call_operand.hbm [shape: f32[16,64], index: 3, kind: output, shape index: {}]  }
   0x1   :  { %10 = vsyncpa [#allocation3 + $0x1], 0 }
   0x2   :  { %11 = vsyncpa [#allocation6], 0 }
   0x3   :  { %12 = vsyncpa [#allocation4], 0 }
   0x4   :  { %14 = vsyncpa [#allocation4 + $0x1], 0  ;;  %s778_s12 = smov 0   ;;  %s780_s13 = smov 0  }
   0x5   :  { %s782_s14 = smov 0   ;;  %s784_s15 = smov 0  }
   0x6   :  { %s786_s16 = smov 0   ;;  %s788_s17 = smov 0  }
   0x7 LB: > { %s446_s18 = sadd.s32 4294967295, %s747_s17   ;;  %s447_s19 = sadd.s32 4294967294, %s747_s17   ;;  %s747_s17 = sphi %s788_s17, %s20_s17   ;;  %s743_s16 = sphi %s786_s16, %s1054_s16   ;;  %s739_s15 = sphi %s784_s15, %s1053_s15   ;;  %s735_s14 = sphi %s782_s14, %s1052_s14   ;;  %s731_s13 = sphi %s780_s13, %s1051_s13   ;;  %s727_s12 = sphi %s778_s12, %s1050_s12  }
   0x8   : > { %p52_p0 = scmp.ne.s32.totalorder %s731_s13, %s727_s12  ;;  %p812_p1 = scmp.eq.s32.totalorder %s446_s18, 0 }
   0x9   : > { %p816_p2 = scmp.eq.s32.totalorder %s446_s18, 1  ;;  %p136_p3 = scmp.eq.s32.totalorder %s447_s19, 1 }
   0xa   : > { %s1037_s20 = scalar_select %p812_p1, 1, 0 }
   0xb   : > { %p822_p4 = por %p812_p1, %p52_p0  ;;  %p448_p5 = scmp.ge.s32.totalorder %s747_s17, 1 }
   0xc   : > { %p827_p6 = por %p136_p3, %p52_p0  ;;  %p143_p7 = scmp.lt.s32.totalorder %s747_s17, 3 }
   0xd   : > { %s1039_s22 = scalar_select %p822_p4, 1, 0 }
   0xe   : > { %s1040_s23 = scalar_select %p827_p6, 1, 0 }
   0xf   : > { %p832_p8 = pnand %p448_p5, %p143_p7  ;;  %s749_s25 = smov [#allocation5]  }
  0x10   : > { %s157_s26 = sshll.u32 %s749_s25, 4  ;;  %s750_s28 = smov [#allocation7]   ;;  %s836_s26 = int_to_ptr.vmem [resolvable:$true] %s157_s26 }
  0x11   : > { %p499_p9 = pneg %p832_p8  ;;  %s173_s29 = sshll.u32 %s750_s28, 4  ;;  %s847_s29 = int_to_ptr.vmem [resolvable:$true] %s173_s29 }
  0x12   : > { %s575_s5 = scalar_lea.hbm %s1030_s1, 512 }
  0x13   : > { %p843_p11 = pnand %p499_p9, %p812_p1  ;;  %p576_p12 = scmp.ne.s32.totalorder %s1030_s1, %s575_s5 }
  0x14   : > { %p582_p5 = scmp.lt.u32.totalorder %s575_s5, %s1030_s1 }
  0x15   : > { %p577_p13 = pneg %p843_p11 }
  0x17   : > { %p578_p0 = pnand %p577_p13, %p576_p12 }
  0x19   : > { %p579_p3 = pneg %p578_p0 }
  0x1b   : > { %p584_p7 = pnand %p582_p5, %p579_p3 }
  0x1d   : > { %587 = shalt.err (!%p584_p7)
}
  0x1e   : > { %s588_s10 = scalar_lea.vmem %s836_s26, 512  ;;  %p596_p1 = scmp.lt.s32.totalorder %s836_s26, %s836_s26 }
  0x1f   : > { %p589_p9 = scmp.ne.s32.totalorder %s836_s26, %s588_s10  ;;  %p597_p12 = scmp.lt.s32.totalorder %s588_s10, %s588_s10 }
  0x21   : > { %p591_p10 = pnand %p589_p9, %p577_p13  ;;  %p598_p0 = por %p597_p12, %p596_p1 }
  0x23   : > { %p592_p6 = pneg %p591_p10 }
  0x25   : > { %p599_p4 = pnand %p598_p0, %p592_p6 }
  0x27   : > { %602 = shalt.err (!%p599_p4)
}
  0x28   : > { %s751_s11 = smov 128   ;;  %s752_s18 = smov 8  }
  0x29   : > { %502 = dma.hbm_to_vmem [thread:$0]  (!%p843_p11), %s1030_s1, 512, %s836_s26, [#allocation6], %s751_s11, %s751_s11, %s752_s18  }
  0x2a   : > { %s603_s4 = scalar_lea.hbm %s1031_s2, 16 }
  0x2b   : > { %p604_p1 = scmp.ne.s32.totalorder %s1031_s2, %s603_s4  ;;  %p610_p10 = scmp.lt.u32.totalorder %s603_s4, %s1031_s2 }
  0x2d   : > { %p606_p4 = pnand %p604_p1, %p577_p13 }
  0x2f   : > { %p607_p6 = pneg %p606_p4 }
  0x31   : > { %p612_p3 = pnand %p610_p10, %p607_p6 }
  0x33   : > { %615 = shalt.err (!%p612_p3)
}
  0x34   : > { %s616_s26 = scalar_lea.vmem %s847_s29, 16  ;;  %s623_s9 = scalar_lea.vmem %s847_s29, 32 }
  0x35   : > { %p617_p5 = scmp.ne.s32.totalorder %s847_s29, %s616_s26  ;;  %p624_p12 = scmp.lt.s32.totalorder %s847_s29, %s847_s29 }
  0x36   : > { %p625_p0 = scmp.lt.s32.totalorder %s623_s9, %s616_s26 }
  0x37   : > { %p619_p7 = pnand %p617_p5, %p577_p13 }
  0x38   : > { %p626_p1 = por %p625_p0, %p624_p12 }
  0x39   : > { %p620_p9 = pneg %p619_p7 }
  0x3b   : > { %p627_p4 = pnand %p626_p1, %p620_p9 }
  0x3d   : > { %630 = shalt.err (!%p627_p4)
}
  0x3e   : > { %505 = dma.hbm_to_vmem [thread:$0]  (!%p843_p11), %s1031_s2, 16, %s847_s29, [#allocation6]  }
  0x3f   : > { %s29_s18 = sadd.s32 1, %s743_s16  ;;  %s39_s19 = sadd.s32 1, %s735_s14 }
  0x40   : > { %p30_p13 = scmp.ge.s32.totalorder %s29_s18, 2  ;;  %p46_p6 = scmp.ne.s32.totalorder %s735_s14, %s731_s13 }
  0x41   : > { %p47_p10 = scmp.eq.s32.totalorder %s747_s17, 0  ;;  %p516_p3 = scmp.lt.s32.totalorder %s747_s17, 2 }
  0x42   : > { %s1056_s18 = smov (%p30_p13, %s29_s18), 0  ;;  %p912_p7 = por %p816_p2, %p46_p6 }
  0x43   : > { %p48_p5 = por %p47_p10, %p46_p6  ;;  %s36_s25 = ssub.s32 %s743_s16, %s1056_s18 }
  0x44   : > { %s1043_s27 = scalar_select %p912_p7, 1, 0 }
  0x45   : > { %s184_s28 = sand.u32 1, %s735_s14   ;;  %p37_p9 = scmp.eq.s32.totalorder %s36_s25, 0 }
  0x46   : > { %s452_s29 = sshll.u32 %s184_s28, 3  ;;  %s453_s30 = sshll.u32 %s743_s16, 7 }
  0x47   : > { %s921_s4 = scalar_select %p37_p9, %s735_s14, %s39_s19  }
  0x48   : > { %s926_s7 = scalar_lea.hbm %s1029_s0, %s453_s30  ;;  %s188_s21 = scalar_lea.vmem [#allocation2], %s452_s29 }
  0x49   : > { %s195_s8 = sshll.u32 %s188_s21, 4  ;;  %p930_p2 = pnand %p516_p3, %p48_p5  ;;  %s934_s8 = int_to_ptr.vmem [resolvable:$true] %s195_s8 }
  0x4a   : > { %s185_s9 = scalar_lea.sflag [#allocation3], %s184_s28  ;;  %s631_s10 = scalar_lea.hbm %s926_s7, 128 }
  0x4b   : > { %p632_p11 = scmp.ne.s32.totalorder %s926_s7, %s631_s10  ;;  %p633_p12 = pneg %p930_p2 }
  0x4c   : > { %s636_s25 = scalar_lea.hbm %s1029_s0, 256  ;;  %p637_p4 = scmp.lt.u32.totalorder %s926_s7, %s1029_s0 }
  0x4d   : > { %p634_p0 = pnand %p633_p12, %p632_p11  ;;  %p638_p13 = scmp.lt.u32.totalorder %s636_s25, %s631_s10 }
  0x4e   : > { %p640_p10 = scmp.lt.u32.totalorder %s631_s10, %s926_s7 }
  0x4f   : > { %p635_p1 = pneg %p634_p0  ;;  %p639_p6 = por %p638_p13, %p637_p4 }
  0x51   : > { %p641_p3 = por %p640_p10, %p639_p6 }
  0x53   : > { %p642_p5 = pnand %p641_p3, %p635_p1 }
  0x55   : > { %645 = shalt.err (!%p642_p5)
}
  0x56   : > { %s646_s28 = scalar_lea.vmem %s934_s8, 128  ;;  %s753_s5 = smov [#allocation2]  }
  0x57   : > { %p647_p9 = scmp.ne.s32.totalorder %s934_s8, %s646_s28  ;;  %s651_s6 = sshll.u32 %s753_s5, 4  ;;  %s652_s6 = int_to_ptr.vmem [resolvable:$false] %s651_s6 }
  0x58   : > { %s653_s21 = scalar_lea.vmem %s652_s6, 256  ;;  %p654_p7 = scmp.lt.s32.totalorder %s934_s8, %s652_s6 }
  0x59   : > { %p649_p11 = pnand %p647_p9, %p633_p12  ;;  %p655_p4 = scmp.lt.s32.totalorder %s653_s21, %s646_s28 }
  0x5b   : > { %p650_p0 = pneg %p649_p11  ;;  %p656_p13 = por %p655_p4, %p654_p7 }
  0x5d   : > { %p657_p6 = pnand %p656_p13, %p650_p0 }
  0x5f   : > { %660 = shalt.err (!%p657_p6)
}
  0x60   : > { %509 = dma.hbm_to_vmem [thread:$0]  (!%p930_p2), %s926_s7, 128, %s934_s8, %s185_s9  }
  0x61   : > { %204 = sbr.rel (%p832_p8) target bundleno = 347 (0x15b), region = 32  ;;  %s964_s10 = sand.u32 (!%p832_p8), 1, %s731_s13  }
  0x62   : > { %s455_s11 = sshll.u32 (!%p832_p8), %s964_s10, 3  ;;  %s207_s19 = scalar_lea.sflag (!%p832_p8), [#allocation3], %s964_s10 }
  0x63   : > { %s210_s25 = scalar_lea.vmem (!%p832_p8), [#allocation2], %s455_s11  ;;  %p1045_p7 = scmp.ne.s32.totalorder (!%p832_p8), %s1039_s22, 0 }
  0x68   : > { %714 = dma.done.wait (%p1045_p7), %s207_s19, 128  }
  0x69   : > { %716 = vsyncadd (%p1045_p7), %s207_s19, 4294967168  ;;  %p1046_p12 = scmp.ne.s32.totalorder %s1037_s20, 0 }
  0x6b   : > { %718 = dma.done.wait (%p1046_p12), [#allocation6], 528  }
  0x6c   : > { %720 = vsyncadd (%p1046_p12), [#allocation6], 4294966768  ;;  %v754_v0 = vmov 0.0|0.0   ;;  %vm755_vm0 = vmmov 0   ;;  %v756_v1 = vmov 0.0   ;;  %v242_v2 = vld [vmem:[#allocation5] sm:$0xff] }
  0x6d   : > { %481 = vmatprep.subr.bf16.mxu0 %v754_v0  ;;  %478 = vmatprep.mubr.msk.f32.mxu0 %vm755_vm0, %v756_v1  ;;  %v243_v3 = vld [vmem:[#allocation5 + $0x8] sm:$0xff]  ;;  %v244_v4 = vld [vmem:[#allocation5 + $0x10] sm:$0xff]  ;;  %v245_v6 = vld [vmem:[#allocation5 + $0x18] sm:$0xff]  ;;  %vm253_vm1 = vcmask 261120   ;;  %s462_s20 = sshll.u32 %s739_s15, 7  ;;  %s240_s22 = scalar_lea.vmem [#allocation8], %s455_s11 }
  0x6e   : > { %v482_v5 = vpack.c.bf16 %v243_v3, %v242_v2  ;;  %v485_v7 = vpack.c.bf16 %v245_v6, %v244_v4  ;;  %v241_v8 = vld [vmem:[%s210_s25] sm:$0xff]  ;;  %v459_v9 = vld [vmem:[#allocation7] ss:$0 sm:$0xff]  ;;  %s344_s24 = sshll.u32 %s240_s22, 4  ;;  %vm327_vm2 = vcmask 523264   ;;  %s980_s26 = scalar_lea.hbm %s1032_s3, %s462_s20  ;;  %s982_s24 = int_to_ptr.vmem [resolvable:$true] %s344_s24 }
  0x6f   : > { %s330_s9 = scalar_lea.sflag [#allocation4], %s964_s10  ;;  %s661_s29 = scalar_lea.vmem %s982_s24, 128 }
  0x70   : > { %483 = vmatpush3.bf16.msra.mxu0 %v482_v5  ;;  %p662_p8 = scmp.ne.s32.totalorder %s982_s24, %s661_s29  ;;  %p1047_p2 = scmp.ne.s32.totalorder %s1043_s27, 0 }
  0x71   : > { %484 = vmatprep.subr.bf16.mxu0 %v754_v0  ;;  %s757_s15 = smov [#allocation8]  }
  0x72   : > { %p663_p1 = pnand %p662_p8, %p1047_p2  ;;  %s665_s30 = sshll.u32 %s757_s15, 4  ;;  %s666_s30 = int_to_ptr.vmem [resolvable:$false] %s665_s30 }
  0x73   : > { %s667_s28 = scalar_lea.vmem %s666_s30, 256  ;;  %p668_p3 = scmp.lt.s32.totalorder %s982_s24, %s666_s30 }
  0x74   : > { %486 = vmatpush3.bf16.msra.mxu0 %v485_v7  ;;  %p664_p10 = pneg %p663_p1  ;;  %p669_p5 = scmp.lt.s32.totalorder %s667_s28, %s661_s29 }
  0x76   : > { %p670_p9 = por %p669_p5, %p668_p3 }
  0x77   : > { %479 = vmatmul.mubr.msk.f32.vlgmr.msra.gmra.mrb[0].mxu0 %vm253_vm1, %v241_v8 }
  0x78   : > { %p671_p11 = pnand %p670_p9, %p664_p10 }
 0x14a   : > { %v323_v10 = vpop.f32.mrb[0].mxu0 }
 0x14b   : > { %v324_v11 = vadd.f32 %v459_v9, %v323_v10  ;;  %v480_v12 = vpop.f32.mrb[1].mxu0 }
 0x14d   : > { %328 = vst.msk [vmem:[%s240_s22] sm:$0xff] %vm327_vm2, %v324_v11 }
 0x14e   : > { %674 = shalt.err (!%p671_p11)
}
 0x14f   : > { %s675_s5 = scalar_lea.hbm %s980_s26, 128  ;;  %s679_s10 = scalar_lea.hbm %s1032_s3, 256 }
 0x150   : > { %p676_p0 = scmp.ne.s32.totalorder %s980_s26, %s675_s5  ;;  %p680_p6 = scmp.lt.u32.totalorder %s980_s26, %s1032_s3 }
 0x151   : > { %p681_p7 = scmp.lt.u32.totalorder %s679_s10, %s675_s5  ;;  %p683_p8 = scmp.lt.u32.totalorder %s675_s5, %s980_s26 }
 0x152   : > { %p677_p4 = pnand %p676_p0, %p1047_p2 }
 0x153   : > { %p682_p12 = por %p681_p7, %p680_p6 }
 0x154   : > { %p678_p13 = pneg %p677_p4 }
 0x155   : > { %p684_p1 = por %p683_p8, %p682_p12 }
 0x157   : > { %p685_p10 = pnand %p684_p1, %p678_p13 }
 0x159   : > { %688 = shalt.err (!%p685_p10)
}
 0x15a   : > { %497 = dma.vmem_to_hbm [thread:$0]  (%p1047_p2), %s982_s24, 128, %s980_s26, %s330_s9  }
 0x15b PF: > { %s356_s25 = sand.u32 1, %s727_s12   ;;  %p1048_p3 = scmp.ne.s32.totalorder %s1040_s23, 0 }
 0x15c   : > { %p1049_p5 = scmp.ge.s32.totalorder %s747_s17, 2  ;;  %s357_s20 = scalar_lea.sflag [#allocation4], %s356_s25 }
 0x15e   : > { %p511_p9 = pnand %p1049_p5, %p1048_p3 }
 0x160   : > { %722 = dma.done.wait (!%p511_p9), %s357_s20, 128  }
 0x161   : > { %724 = vsyncadd (!%p511_p9), %s357_s20, 4294967168  ;;  %s20_s17 = sadd.s32 1, %s747_s17   ;;  %s1050_s12 = smov %s731_s13 }
 0x162   : > { %p17_p11 = scmp.ge.s32.totalorder %s20_s17, 4   ;;  %s1051_s13 = smov %s735_s14 }
 0x163   : > { %s1052_s14 = smov %s921_s4  ;;  %s1053_s15 = smov %s743_s16 }
 0x164   : > { %s1054_s16 = smov %s1056_s18  ;;  %19 = sbr.rel (!%p17_p11) target bundleno = 7 (0x7), region = 87 }
 0x16b   :  { %362 = vsyncpa [#allocation3], 1 }
 0x16c   :  { %364 = vsyncpa [#allocation3 + $0x1], 1 }
 0x16d   :  { %365 = vsyncpa [#allocation6], 1 }
 0x16e   :  { %366 = vsyncpa [#allocation4], 1 }
 0x16f   :  { %368 = vsyncpa [#allocation4 + $0x1], 1 }

</bundles_post_ra>
